<compile_context>
chip_gen: v5e
topology: v5e:2x2
jax: 0.10.0
libtpu: 0.0.40
codegen_flags: <defaults>
</compile_context>

<pallas_src>
import functools
import math
import numpy as np

import jax
import jax.numpy as jnp
from jax.experimental import pallas as pl
from jax.experimental.pallas import tpu as pltpu


# ----------------------------------------------------------------------------
# Pallas kernel: one GRU layer, both directions fused, gates fused into one matmul.
# ----------------------------------------------------------------------------
def _make_gru_kernel(t_tile, h_size, t_real, unroll):
    H = h_size
    needs_mask = (t_real % t_tile) != 0  # static: padded timesteps exist

    def kernel(gi_ref, h0_ref, whh_ref, bhn_ref, out_ref, hT_ref, h_scr, o_scr):
        d = pl.program_id(0)                  # 0 = forward, 1 = backward ("parallel")
        c = pl.program_id(1)                  # time-chunk index ("arbitrary")
        nc = pl.num_programs(1)

        @pl.when(c == 0)
        def _():                              # (re)load initial hidden per direction
            h_scr[...] = h0_ref[...].astype(jnp.float32)

        # Loop-invariant loads: fused recurrent weights + n-gate recurrent bias.
        w_all = whh_ref[...]                  # (H, 3H)  f32 or bf16 MXU operand
        b_n = bhn_ref[...].astype(jnp.float32)  # (1, H)

        # Global time-block index of this chunk (fw: c, bw: nc-1-c).
        c_blk = (1 - d) * c + d * (nc - 1 - c)

        def step(i, h):
            # forward walks local time 0..t_tile-1; backward walks t_tile-1..0
            tt = (1 - d) * i + d * (t_tile - 1 - i)
            gi_t = gi_ref[tt].astype(jnp.float32)        # (B, 3H), one contiguous load
            gh = jnp.dot(h.astype(w_all.dtype), w_all,   # ONE fused (B,H)x(H,3H) matmul
                         preferred_element_type=jnp.float32)
            r = jax.nn.sigmoid(gi_t[:, :H] + gh[:, :H])
            z = jax.nn.sigmoid(gi_t[:, H:2 * H] + gh[:, H:2 * H])
            n = jnp.tanh(gi_t[:, 2 * H:] + r * (gh[:, 2 * H:] + b_n))
            h_new = (1.0 - z) * n + z * h
            if needs_mask:                                # mask padded timesteps
                valid = (c_blk * t_tile + tt) < t_real
                h_new = jnp.where(valid, h_new, h)
            o_scr[tt] = h_new                             # per-step write to VMEM scratch
            return h_new

        h_last = jax.lax.fori_loop(0, t_tile, step, h_scr[...],
                                   unroll=min(unroll, t_tile))
        h_scr[...] = h_last                               # carry hidden across chunks
        out_ref[...] = o_scr[...].astype(out_ref.dtype)   # ONE block store per chunk

        @pl.when(c == nc - 1)                             # write h_T once per direction
        def _():
            hT_ref[...] = h_last.astype(hT_ref.dtype)

    return kernel


def gru_bidir_layer(gi, h0, w_hh_fused, b_hh_n, *, t_tile, t_real,
                    out_dtype=jnp.float32, unroll=4,
                    vmem_limit_bytes=32 * 1024 * 1024):
    """Both directions of one GRU layer.

    gi          : (2, T_pad, B, 3H)  hoisted input projections (biases folded), f32/bf16
    h0          : (2, B, H) f32
    w_hh_fused  : (2, H, 3H)         fused recurrent weights (f32 or bf16)
    b_hh_n      : (2, 1, H) f32      n-gate recurrent bias
    returns (out (2, T_pad, B, H) out_dtype, hT (2, B, H) f32)
    """
    _, T_pad, B, threeH = gi.shape
    H = threeH // 3
    nc = T_pad // t_tile

    def t_blk(d, c):                  # chunk order: fw 0..nc-1, bw nc-1..0
        return (1 - d) * c + d * (nc - 1 - c)

    def gi_map(d, c):
        return (d, t_blk(d, c), 0, 0)

    def out_map(d, c):
        return (d, t_blk(d, c), 0, 0)

    kernel = _make_gru_kernel(t_tile, H, t_real, unroll)

    out, hT = pl.pallas_call(
        kernel,
        out_shape=(jax.ShapeDtypeStruct((2, T_pad, B, H), out_dtype),
                   jax.ShapeDtypeStruct((2, B, H), jnp.float32)),
        grid_spec=pltpu.PrefetchScalarGridSpec(
            num_scalar_prefetch=0,
            grid=(2, nc),
            in_specs=[
                pl.BlockSpec((None, t_tile, B, threeH), gi_map),          # gi
                pl.BlockSpec((None, B, H), lambda d, c: (d, 0, 0)),       # h0
                pl.BlockSpec((None, H, threeH), lambda d, c: (d, 0, 0)),  # fused W_hh
                pl.BlockSpec((None, 1, H), lambda d, c: (d, 0, 0)),       # b_hh (n gate)
            ],
            out_specs=[
                pl.BlockSpec((None, t_tile, B, H), out_map),              # per-step outs
                pl.BlockSpec((None, B, H), lambda d, c: (d, 0, 0)),       # final hidden
            ],
            scratch_shapes=[pltpu.VMEM((B, H), jnp.float32),              # carried hidden
                            pltpu.VMEM((t_tile, B, H), jnp.float32)],     # chunk outputs
        ),
        compiler_params=pltpu.CompilerParams(
            dimension_semantics=("parallel", "arbitrary"),
            vmem_limit_bytes=vmem_limit_bytes),
    )(gi, h0, w_hh_fused, b_hh_n)
    return out, hT


# ----------------------------------------------------------------------------
# Encoder forward (glue around the Pallas kernel)
# ----------------------------------------------------------------------------
def encoder_forward(params, input_seqs, hidden_size, n_layers, hidden=None, *,
                    t_tile=32, unroll=4, act_dtype=jnp.float32,
                    mxu_dtype=jnp.float32, vmem_limit_bytes=32 * 1024 * 1024):
    """input_seqs: (T, B) int32 token ids -> (outputs (T,B,H), hidden (2L,B,H))."""
    emb = jnp.take(params["embedding"], input_seqs, axis=0).astype(jnp.float32)  # (T,B,E)
    T, B_real, _ = emb.shape
    H = hidden_size
    if hidden is None:
        hidden = jnp.zeros((n_layers * 2, B_real, H), jnp.float32)

    # Pad batch to >= 8 sublanes (padded rows are independent; sliced off at the end).
    B = B_real
    if B < 8:
        emb = jnp.pad(emb, ((0, 0), (0, 8 - B), (0, 0)))
        hidden = jnp.pad(hidden, ((0, 0), (0, 8 - B), (0, 0)))
        B = 8

    # Pad T up to a multiple of t_tile; padded steps are masked inside the kernel.
    t_tile_eff = max(1, min(t_tile, T))
    nc = pl.cdiv(T, t_tile_eff)
    T_pad = nc * t_tile_eff

    # Fold b_ih (all gates) + b_hh (r,z gates) into gi; keep n-gate b_hh in the loop.
    gate_mask = jnp.concatenate([jnp.ones((2 * H,), jnp.float32),
                                 jnp.zeros((H,), jnp.float32)])

    layer_in = emb        # layer 0: (T,B,E); deeper layers: (2,T_pad,B,H) direction pair
    h_finals = []
    for l in range(n_layers):
        p = params["gru"][l]
        w_ih, w_hh = p["w_ih"], p["w_hh"]          # (2, Din, 3H), (2, H, 3H)
        b_ih, b_hh = p["b_ih"], p["b_hh"]          # (2, 3H), (2, 3H)

        # Hoisted input projection: one big MXU matmul per layer, outside the recurrence.
        if l == 0:
            gi = jnp.einsum("tbe,deg->dtbg",
                            layer_in.astype(mxu_dtype), w_ih.astype(mxu_dtype),
                            preferred_element_type=jnp.float32)
        else:
            # No concat copy: split W_ih's 2H input axis into fw/bw halves.
            w_ih_split = w_ih.reshape(2, 2, H, 3 * H)   # (dst_dir, src_dir, H, 3H)
            gi = jnp.einsum("jtbh,djhg->dtbg",
                            layer_in.astype(mxu_dtype), w_ih_split.astype(mxu_dtype),
                            preferred_element_type=jnp.float32)
        b_fold = b_ih + b_hh * gate_mask[None, :]                  # (2, 3H)
        gi = gi + b_fold[:, None, None, :]                         # (2, T, B, 3H)
        if gi.shape[1] != T_pad:                                   # pad time (layer 0 only)
            gi = jnp.pad(gi, ((0, 0), (0, T_pad - gi.shape[1]), (0, 0), (0, 0)))
        gi = gi.astype(act_dtype)                                  # halve the HBM stream

        h0 = jnp.stack([hidden[2 * l], hidden[2 * l + 1]])         # (2, B, H)
        b_hh_n = b_hh[:, 2 * H:].reshape(2, 1, H)                  # (2, 1, H)

        is_last = (l == n_layers - 1)
        out_pair, hT_pair = gru_bidir_layer(
            gi, h0, w_hh.astype(mxu_dtype), b_hh_n,
            t_tile=t_tile_eff, t_real=T,
            out_dtype=(jnp.float32 if is_last else act_dtype),
            unroll=unroll, vmem_limit_bytes=vmem_limit_bytes)

        layer_in = out_pair                                        # (2, T_pad, B, H)
        h_finals.append(hT_pair[0])
        h_finals.append(hT_pair[1])

    hidden_out = jnp.stack(h_finals, axis=0)[:, :B_real]           # (2L, B, H)
    # Final fw+bw sum: plain XLA add (no extra pallas_call round trip).
    outputs = (layer_in[0, :T, :B_real] + layer_in[1, :T, :B_real]).astype(jnp.float32)
    return outputs, hidden_out


# ----------------------------------------------------------------------------
# Parameter init (re-parameterized storage of nn.Embedding / nn.GRU weights)
# Gate order along the 3H axis is (r | z | n), matching PyTorch.
# ----------------------------------------------------------------------------
def init_params(key, input_size, embed_size, hidden_size, n_layers):
    H = hidden_size
    bound = 1.0 / math.sqrt(H)
    key, k_emb = jax.random.split(key)
    params = {
        "embedding": jax.random.normal(k_emb, (input_size, embed_size), jnp.float32),
        "gru": [],
    }
    for l in range(n_layers):
        din = embed_size if l == 0 else 2 * H
        key, k1, k2, k3, k4 = jax.random.split(key, 5)
        params["gru"].append({
            "w_ih": jax.random.uniform(k1, (2, din, 3 * H), jnp.float32, -bound, bound),
            "w_hh": jax.random.uniform(k2, (2, H, 3 * H), jnp.float32, -bound, bound),
            "b_ih": jax.random.uniform(k3, (2, 3 * H), jnp.float32, -bound, bound),
            "b_hh": jax.random.uniform(k4, (2, 3 * H), jnp.float32, -bound, bound),
        })
    return params


# ----------------------------------------------------------------------------
# Pure-JAX reference (matches PyTorch GRU semantics) for validation
# ----------------------------------------------------------------------------
def _gru_dir_ref(x, h0, w_ih, w_hh, b_ih, b_hh, H):
    def step(h, xt):
        gi = xt @ w_ih + b_ih                        # (B, 3H)
        gh = h @ w_hh + b_hh                         # (B, 3H)
        r = jax.nn.sigmoid(gi[:, :H] + gh[:, :H])
        z = jax.nn.sigmoid(gi[:, H:2 * H] + gh[:, H:2 * H])
        n = jnp.tanh(gi[:, 2 * H:] + r * gh[:, 2 * H:])
        h_new = (1.0 - z) * n + z * h
        return h_new, h_new

    hT, outs = jax.lax.scan(step, h0, x)
    return outs, hT


def encoder_ref(params, input_seqs, hidden_size, n_layers):
    emb = jnp.take(params["embedding"], input_seqs, axis=0).astype(jnp.float32)
    T, B, _ = emb.shape
    H = hidden_size
    hidden = jnp.zeros((n_layers * 2, B, H), jnp.float32)
    layer_in = emb
    h_finals = []
    out_fw = out_bw = None
    for l in range(n_layers):
        p = params["gru"][l]
        out_fw, hT_fw = _gru_dir_ref(layer_in, hidden[2 * l],
                                     p["w_ih"][0], p["w_hh"][0],
                                     p["b_ih"][0], p["b_hh"][0], H)
        out_bw_rev, hT_bw = _gru_dir_ref(layer_in[::-1], hidden[2 * l + 1],
                                         p["w_ih"][1], p["w_hh"][1],
                                         p["b_ih"][1], p["b_hh"][1], H)
        out_bw = out_bw_rev[::-1]
        layer_in = jnp.concatenate([out_fw, out_bw], axis=-1)
        h_finals += [hT_fw, hT_bw]
    return out_fw + out_bw, jnp.stack(h_finals, axis=0)


# ----------------------------------------------------------------------------
if __name__ == "__main__":
    input_size, embed_size, hidden_size, n_layers, dropout = 16, 32, 32, 2, 0.1
    T, B = 10, 2          # T not a multiple of t_tile -> exercises padded/masked path
    T_TILE = 4            # 3 chunks/direction: exercises chunked recurrence + reversal

    key = jax.random.PRNGKey(0)
    k_params, k_data = jax.random.split(key)
    params = init_params(k_params, input_size, embed_size, hidden_size, n_layers)
    input_seqs = jax.random.randint(k_data, (T, B), 0, input_size, jnp.int32)

    ref_out, ref_hid = encoder_ref(params, input_seqs, hidden_size, n_layers)

    # f32 path (v5e-safe defaults): exact correctness check.
    fwd = jax.jit(functools.partial(encoder_forward, hidden_size=hidden_size,
                                    n_layers=n_layers, t_tile=T_TILE, unroll=4))
    outputs, hidden = fwd(params, input_seqs)
    jax.block_until_ready((outputs, hidden))
    np.testing.assert_allclose(np.asarray(outputs), np.asarray(ref_out),
                               rtol=1e-4, atol=1e-4)
    np.testing.assert_allclose(np.asarray(hidden), np.asarray(ref_hid),
                               rtol=1e-4, atol=1e-4)
    assert outputs.shape == (T, B, hidden_size)
    assert hidden.shape == (n_layers * 2, B, hidden_size)

    # bf16 activation-stream + bf16 MXU-operand path (v6e/v7x recommendation):
    # validated numerically against the same f32 reference at a looser tolerance.
    fwd_bf16 = jax.jit(functools.partial(
        encoder_forward, hidden_size=hidden_size, n_layers=n_layers, t_tile=T_TILE,
        unroll=4, act_dtype=jnp.bfloat16, mxu_dtype=jnp.bfloat16))
    out_bf16, hid_bf16 = fwd_bf16(params, input_seqs)
    jax.block_until_ready((out_bf16, hid_bf16))
    np.testing.assert_allclose(np.asarray(out_bf16, dtype=np.float32),
                               np.asarray(ref_out), rtol=5e-2, atol=5e-2)
    np.testing.assert_allclose(np.asarray(hid_bf16, dtype=np.float32),
                               np.asarray(ref_hid), rtol=5e-2, atol=5e-2)

    print("KERNEL_OK")
</pallas_src>

<mosaic_0001>
module attributes {stable_mosaic.version = 11 : i64} {
  func.func @kernel(%arg0: i32, %arg1: i32, %arg2: memref<1x4x8x96xf32, #tpu.memory_space<vmem>>, %arg3: memref<1x8x32xf32, #tpu.memory_space<vmem>>, %arg4: memref<1x32x96xf32, #tpu.memory_space<vmem>>, %arg5: memref<1x1x32xf32, #tpu.memory_space<vmem>>, %arg6: memref<1x4x8x32xf32, #tpu.memory_space<vmem>>, %arg7: memref<1x8x32xf32, #tpu.memory_space<vmem>>, %arg8: memref<8x32xf32, #tpu.memory_space<vmem>>, %arg9: memref<4x8x32xf32, #tpu.memory_space<vmem>>) attributes {dimension_semantics = [#tpu.dimension_semantics<parallel>, #tpu.dimension_semantics<arbitrary>], iteration_bounds = array<i64: 2, 3>, scalar_prefetch = 0 : i64, scratch_operands = 2 : i64, tpu.core_type = #tpu.core_type<tc>, window_params = [{transform_indices = @transform_0, window_bounds = array<i64: 1, 4, 8, 96>}, {transform_indices = @transform_1, window_bounds = array<i64: 1, 8, 32>}, {transform_indices = @transform_2, window_bounds = array<i64: 1, 32, 96>}, {transform_indices = @transform_3, window_bounds = array<i64: 1, 1, 32>}, {transform_indices = @transform_4, window_bounds = array<i64: 1, 4, 8, 32>}, {transform_indices = @transform_5, window_bounds = array<i64: 1, 8, 32>}]} {
    %c0_i32 = arith.constant 0 : i32
    %0 = arith.cmpi eq, %arg1, %c0_i32 : i32
    %1 = arith.extui %0 : i1 to i32
    %c0_i32_0 = arith.constant 0 : i32
    %2 = arith.cmpi ne, %1, %c0_i32_0 : i32
    scf.if %2 {
      %c0_72 = arith.constant 0 : index
      %c0_73 = arith.constant 0 : index
      %c0_74 = arith.constant 0 : index
      %201 = vector.load %arg3[%c0_72, %c0_73, %c0_74] : memref<1x8x32xf32, #tpu.memory_space<vmem>>, vector<1x8x32xf32>
      %202 = vector.shape_cast %201 : vector<1x8x32xf32> to vector<8x32xf32>
      %c0_75 = arith.constant 0 : index
      %c0_76 = arith.constant 0 : index
      %203 = vector.load %arg8[%c0_75, %c0_76] : memref<8x32xf32, #tpu.memory_space<vmem>>, vector<8x32xf32>
      tpu.vector_store %arg8[%c0_75, %c0_76], %202 {strides = array<i32>} : memref<8x32xf32, #tpu.memory_space<vmem>>, vector<8x32xf32>,
    } else {
    }
    %c0 = arith.constant 0 : index
    %c0_1 = arith.constant 0 : index
    %c0_2 = arith.constant 0 : index
    %3 = vector.load %arg4[%c0, %c0_1, %c0_2] : memref<1x32x96xf32, #tpu.memory_space<vmem>>, vector<1x32x96xf32>
    %4 = vector.shape_cast %3 : vector<1x32x96xf32> to vector<32x96xf32>
    %c0_3 = arith.constant 0 : index
    %c0_4 = arith.constant 0 : index
    %c0_5 = arith.constant 0 : index
    %5 = vector.load %arg5[%c0_3, %c0_4, %c0_5] : memref<1x1x32xf32, #tpu.memory_space<vmem>>, vector<1x1x32xf32>
    %6 = vector.shape_cast %5 : vector<1x1x32xf32> to vector<1x32xf32>
    %c1_i32 = arith.constant 1 : i32
    %7 = arith.subi %c1_i32, %arg0 : i32
    %8 = arith.muli %7, %arg1 : i32
    %c2_i32 = arith.constant 2 : i32
    %9 = arith.subi %c2_i32, %arg1 : i32
    %10 = arith.muli %arg0, %9 : i32
    %11 = arith.addi %8, %10 : i32
    %c0_6 = arith.constant 0 : index
    %c0_7 = arith.constant 0 : index
    %12 = vector.load %arg8[%c0_6, %c0_7] : memref<8x32xf32, #tpu.memory_space<vmem>>, vector<8x32xf32>
    %c0_i32_8 = arith.constant 0 : i32
    %c1_i32_9 = arith.constant 1 : i32
    %13 = arith.subi %c1_i32_9, %arg0 : i32
    %14 = arith.muli %13, %c0_i32_8 : i32
    %c3_i32 = arith.constant 3 : i32
    %15 = arith.subi %c3_i32, %c0_i32_8 : i32
    %16 = arith.muli %arg0, %15 : i32
    %17 = arith.addi %14, %16 : i32
    %c0_10 = arith.constant 0 : index
    %18 = arith.index_cast %17 : i32 to index
    %c0_11 = arith.constant 0 : index
    %c0_12 = arith.constant 0 : index
    %19 = vector.load %arg2[%c0_10, %18, %c0_11, %c0_12] : memref<1x4x8x96xf32, #tpu.memory_space<vmem>>, vector<1x1x8x96xf32>
    %20 = vector.shape_cast %19 : vector<1x1x8x96xf32> to vector<8x96xf32>
    %cst = arith.constant dense<0.000000e+00> : vector<8x96xf32>
    %21 = tpu.matmul %12, %4, %cst {dimension_numbers = #tpu.dot_dimension_numbers<[1], [0], [0], [1], [0, 0, 1, 1], [], []>} : vector<8x32xf32>, vector<32x96xf32>, vector<8x96xf32> -> vector<8x96xf32>
    %22 = vector.extract_strided_slice %20 {offsets = [0, 0], sizes = [8, 32], strides = [1, 1]} : vector<8x96xf32> to vector<8x32xf32>
    %23 = vector.extract_strided_slice %21 {offsets = [0, 0], sizes = [8, 32], strides = [1, 1]} : vector<8x96xf32> to vector<8x32xf32>
    %24 = arith.addf %22, %23 : vector<8x32xf32>
    %25 = arith.negf %24 : vector<8x32xf32>
    %26 = math.exp %25 : vector<8x32xf32>
    %cst_13 = arith.constant 1.000000e+00 : f32
    %27 = vector.broadcast %cst_13 : f32 to vector<8x32xf32>
    %28 = arith.addf %27, %26 : vector<8x32xf32>
    %29 = arith.divf %27, %28 : vector<8x32xf32>
    %30 = vector.extract_strided_slice %20 {offsets = [0, 32], sizes = [8, 32], strides = [1, 1]} : vector<8x96xf32> to vector<8x32xf32>
    %31 = vector.extract_strided_slice %21 {offsets = [0, 32], sizes = [8, 32], strides = [1, 1]} : vector<8x96xf32> to vector<8x32xf32>
    %32 = arith.addf %30, %31 : vector<8x32xf32>
    %33 = arith.negf %32 : vector<8x32xf32>
    %34 = math.exp %33 : vector<8x32xf32>
    %cst_14 = arith.constant 1.000000e+00 : f32
    %35 = vector.broadcast %cst_14 : f32 to vector<8x32xf32>
    %36 = arith.addf %35, %34 : vector<8x32xf32>
    %37 = arith.divf %35, %36 : vector<8x32xf32>
    %38 = vector.extract_strided_slice %20 {offsets = [0, 64], sizes = [8, 32], strides = [1, 1]} : vector<8x96xf32> to vector<8x32xf32>
    %39 = vector.extract_strided_slice %21 {offsets = [0, 64], sizes = [8, 32], strides = [1, 1]} : vector<8x96xf32> to vector<8x32xf32>
    %40 = vector.broadcast %6 : vector<1x32xf32> to vector<8x32xf32>
    %41 = arith.addf %39, %40 : vector<8x32xf32>
    %42 = arith.mulf %29, %41 : vector<8x32xf32>
    %43 = arith.addf %38, %42 : vector<8x32xf32>
    %44 = math.tanh %43 : vector<8x32xf32>
    %cst_15 = arith.constant 1.000000e+00 : f32
    %45 = vector.broadcast %cst_15 : f32 to vector<8x32xf32>
    %46 = arith.subf %45, %37 : vector<8x32xf32>
    %47 = arith.mulf %46, %44 : vector<8x32xf32>
    %48 = arith.mulf %37, %12 : vector<8x32xf32>
    %49 = arith.addf %47, %48 : vector<8x32xf32>
    %c4_i32 = arith.constant 4 : i32
    %50 = arith.muli %11, %c4_i32 : i32
    %51 = arith.addi %50, %17 : i32
    %c10_i32 = arith.constant 10 : i32
    %52 = arith.cmpi slt, %51, %c10_i32 : i32
    %53 = arith.select %52, %49, %12 : vector<8x32xf32>
    %54 = arith.index_cast %17 : i32 to index
    %c0_16 = arith.constant 0 : index
    %c0_17 = arith.constant 0 : index
    %55 = vector.load %arg9[%54, %c0_16, %c0_17] : memref<4x8x32xf32, #tpu.memory_space<vmem>>, vector<1x8x32xf32>
    %56 = vector.shape_cast %55 : vector<1x8x32xf32> to vector<8x32xf32>
    %57 = vector.shape_cast %53 : vector<8x32xf32> to vector<1x8x32xf32>
    tpu.vector_store %arg9[%54, %c0_16, %c0_17], %57 {strides = array<i32>} : memref<4x8x32xf32, #tpu.memory_space<vmem>>, vector<1x8x32xf32>,
    %c1_i32_18 = arith.constant 1 : i32
    %c1_i32_19 = arith.constant 1 : i32
    %58 = arith.subi %c1_i32_19, %arg0 : i32
    %59 = arith.muli %58, %c1_i32_18 : i32
    %c3_i32_20 = arith.constant 3 : i32
    %60 = arith.subi %c3_i32_20, %c1_i32_18 : i32
    %61 = arith.muli %arg0, %60 : i32
    %62 = arith.addi %59, %61 : i32
    %c0_21 = arith.constant 0 : index
    %63 = arith.index_cast %62 : i32 to index
    %c0_22 = arith.constant 0 : index
    %c0_23 = arith.constant 0 : index
    %64 = vector.load %arg2[%c0_21, %63, %c0_22, %c0_23] : memref<1x4x8x96xf32, #tpu.memory_space<vmem>>, vector<1x1x8x96xf32>
    %65 = vector.shape_cast %64 : vector<1x1x8x96xf32> to vector<8x96xf32>
    %cst_24 = arith.constant dense<0.000000e+00> : vector<8x96xf32>
    %66 = tpu.matmul %53, %4, %cst_24 {dimension_numbers = #tpu.dot_dimension_numbers<[1], [0], [0], [1], [0, 0, 1, 1], [], []>} : vector<8x32xf32>, vector<32x96xf32>, vector<8x96xf32> -> vector<8x96xf32>
    %67 = vector.extract_strided_slice %65 {offsets = [0, 0], sizes = [8, 32], strides = [1, 1]} : vector<8x96xf32> to vector<8x32xf32>
    %68 = vector.extract_strided_slice %66 {offsets = [0, 0], sizes = [8, 32], strides = [1, 1]} : vector<8x96xf32> to vector<8x32xf32>
    %69 = arith.addf %67, %68 : vector<8x32xf32>
    %70 = arith.negf %69 : vector<8x32xf32>
    %71 = math.exp %70 : vector<8x32xf32>
    %cst_25 = arith.constant 1.000000e+00 : f32
    %72 = vector.broadcast %cst_25 : f32 to vector<8x32xf32>
    %73 = arith.addf %72, %71 : vector<8x32xf32>
    %74 = arith.divf %72, %73 : vector<8x32xf32>
    %75 = vector.extract_strided_slice %65 {offsets = [0, 32], sizes = [8, 32], strides = [1, 1]} : vector<8x96xf32> to vector<8x32xf32>
    %76 = vector.extract_strided_slice %66 {offsets = [0, 32], sizes = [8, 32], strides = [1, 1]} : vector<8x96xf32> to vector<8x32xf32>
    %77 = arith.addf %75, %76 : vector<8x32xf32>
    %78 = arith.negf %77 : vector<8x32xf32>
    %79 = math.exp %78 : vector<8x32xf32>
    %cst_26 = arith.constant 1.000000e+00 : f32
    %80 = vector.broadcast %cst_26 : f32 to vector<8x32xf32>
    %81 = arith.addf %80, %79 : vector<8x32xf32>
    %82 = arith.divf %80, %81 : vector<8x32xf32>
    %83 = vector.extract_strided_slice %65 {offsets = [0, 64], sizes = [8, 32], strides = [1, 1]} : vector<8x96xf32> to vector<8x32xf32>
    %84 = vector.extract_strided_slice %66 {offsets = [0, 64], sizes = [8, 32], strides = [1, 1]} : vector<8x96xf32> to vector<8x32xf32>
    %85 = vector.broadcast %6 : vector<1x32xf32> to vector<8x32xf32>
    %86 = arith.addf %84, %85 : vector<8x32xf32>
    %87 = arith.mulf %74, %86 : vector<8x32xf32>
    %88 = arith.addf %83, %87 : vector<8x32xf32>
    %89 = math.tanh %88 : vector<8x32xf32>
    %cst_27 = arith.constant 1.000000e+00 : f32
    %90 = vector.broadcast %cst_27 : f32 to vector<8x32xf32>
    %91 = arith.subf %90, %82 : vector<8x32xf32>
    %92 = arith.mulf %91, %89 : vector<8x32xf32>
    %93 = arith.mulf %82, %53 : vector<8x32xf32>
    %94 = arith.addf %92, %93 : vector<8x32xf32>
    %c4_i32_28 = arith.constant 4 : i32
    %95 = arith.muli %11, %c4_i32_28 : i32
    %96 = arith.addi %95, %62 : i32
    %c10_i32_29 = arith.constant 10 : i32
    %97 = arith.cmpi slt, %96, %c10_i32_29 : i32
    %98 = arith.select %97, %94, %53 : vector<8x32xf32>
    %99 = arith.index_cast %62 : i32 to index
    %c0_30 = arith.constant 0 : index
    %c0_31 = arith.constant 0 : index
    %100 = vector.load %arg9[%99, %c0_30, %c0_31] : memref<4x8x32xf32, #tpu.memory_space<vmem>>, vector<1x8x32xf32>
    %101 = vector.shape_cast %100 : vector<1x8x32xf32> to vector<8x32xf32>
    %102 = vector.shape_cast %98 : vector<8x32xf32> to vector<1x8x32xf32>
    tpu.vector_store %arg9[%99, %c0_30, %c0_31], %102 {strides = array<i32>} : memref<4x8x32xf32, #tpu.memory_space<vmem>>, vector<1x8x32xf32>,
    %c2_i32_32 = arith.constant 2 : i32
    %c1_i32_33 = arith.constant 1 : i32
    %103 = arith.subi %c1_i32_33, %arg0 : i32
    %104 = arith.muli %103, %c2_i32_32 : i32
    %c3_i32_34 = arith.constant 3 : i32
    %105 = arith.subi %c3_i32_34, %c2_i32_32 : i32
    %106 = arith.muli %arg0, %105 : i32
    %107 = arith.addi %104, %106 : i32
    %c0_35 = arith.constant 0 : index
    %108 = arith.index_cast %107 : i32 to index
    %c0_36 = arith.constant 0 : index
    %c0_37 = arith.constant 0 : index
    %109 = vector.load %arg2[%c0_35, %108, %c0_36, %c0_37] : memref<1x4x8x96xf32, #tpu.memory_space<vmem>>, vector<1x1x8x96xf32>
    %110 = vector.shape_cast %109 : vector<1x1x8x96xf32> to vector<8x96xf32>
    %cst_38 = arith.constant dense<0.000000e+00> : vector<8x96xf32>
    %111 = tpu.matmul %98, %4, %cst_38 {dimension_numbers = #tpu.dot_dimension_numbers<[1], [0], [0], [1], [0, 0, 1, 1], [], []>} : vector<8x32xf32>, vector<32x96xf32>, vector<8x96xf32> -> vector<8x96xf32>
    %112 = vector.extract_strided_slice %110 {offsets = [0, 0], sizes = [8, 32], strides = [1, 1]} : vector<8x96xf32> to vector<8x32xf32>
    %113 = vector.extract_strided_slice %111 {offsets = [0, 0], sizes = [8, 32], strides = [1, 1]} : vector<8x96xf32> to vector<8x32xf32>
    %114 = arith.addf %112, %113 : vector<8x32xf32>
    %115 = arith.negf %114 : vector<8x32xf32>
    %116 = math.exp %115 : vector<8x32xf32>
    %cst_39 = arith.constant 1.000000e+00 : f32
    %117 = vector.broadcast %cst_39 : f32 to vector<8x32xf32>
    %118 = arith.addf %117, %116 : vector<8x32xf32>
    %119 = arith.divf %117, %118 : vector<8x32xf32>
    %120 = vector.extract_strided_slice %110 {offsets = [0, 32], sizes = [8, 32], strides = [1, 1]} : vector<8x96xf32> to vector<8x32xf32>
    %121 = vector.extract_strided_slice %111 {offsets = [0, 32], sizes = [8, 32], strides = [1, 1]} : vector<8x96xf32> to vector<8x32xf32>
    %122 = arith.addf %120, %121 : vector<8x32xf32>
    %123 = arith.negf %122 : vector<8x32xf32>
    %124 = math.exp %123 : vector<8x32xf32>
    %cst_40 = arith.constant 1.000000e+00 : f32
    %125 = vector.broadcast %cst_40 : f32 to vector<8x32xf32>
    %126 = arith.addf %125, %124 : vector<8x32xf32>
    %127 = arith.divf %125, %126 : vector<8x32xf32>
    %128 = vector.extract_strided_slice %110 {offsets = [0, 64], sizes = [8, 32], strides = [1, 1]} : vector<8x96xf32> to vector<8x32xf32>
    %129 = vector.extract_strided_slice %111 {offsets = [0, 64], sizes = [8, 32], strides = [1, 1]} : vector<8x96xf32> to vector<8x32xf32>
    %130 = vector.broadcast %6 : vector<1x32xf32> to vector<8x32xf32>
    %131 = arith.addf %129, %130 : vector<8x32xf32>
    %132 = arith.mulf %119, %131 : vector<8x32xf32>
    %133 = arith.addf %128, %132 : vector<8x32xf32>
    %134 = math.tanh %133 : vector<8x32xf32>
    %cst_41 = arith.constant 1.000000e+00 : f32
    %135 = vector.broadcast %cst_41 : f32 to vector<8x32xf32>
    %136 = arith.subf %135, %127 : vector<8x32xf32>
    %137 = arith.mulf %136, %134 : vector<8x32xf32>
    %138 = arith.mulf %127, %98 : vector<8x32xf32>
    %139 = arith.addf %137, %138 : vector<8x32xf32>
    %c4_i32_42 = arith.constant 4 : i32
    %140 = arith.muli %11, %c4_i32_42 : i32
    %141 = arith.addi %140, %107 : i32
    %c10_i32_43 = arith.constant 10 : i32
    %142 = arith.cmpi slt, %141, %c10_i32_43 : i32
    %143 = arith.select %142, %139, %98 : vector<8x32xf32>
    %144 = arith.index_cast %107 : i32 to index
    %c0_44 = arith.constant 0 : index
    %c0_45 = arith.constant 0 : index
    %145 = vector.load %arg9[%144, %c0_44, %c0_45] : memref<4x8x32xf32, #tpu.memory_space<vmem>>, vector<1x8x32xf32>
    %146 = vector.shape_cast %145 : vector<1x8x32xf32> to vector<8x32xf32>
    %147 = vector.shape_cast %143 : vector<8x32xf32> to vector<1x8x32xf32>
    tpu.vector_store %arg9[%144, %c0_44, %c0_45], %147 {strides = array<i32>} : memref<4x8x32xf32, #tpu.memory_space<vmem>>, vector<1x8x32xf32>,
    %c3_i32_46 = arith.constant 3 : i32
    %c1_i32_47 = arith.constant 1 : i32
    %148 = arith.subi %c1_i32_47, %arg0 : i32
    %149 = arith.muli %148, %c3_i32_46 : i32
    %c3_i32_48 = arith.constant 3 : i32
    %150 = arith.subi %c3_i32_48, %c3_i32_46 : i32
    %151 = arith.muli %arg0, %150 : i32
    %152 = arith.addi %149, %151 : i32
    %c0_49 = arith.constant 0 : index
    %153 = arith.index_cast %152 : i32 to index
    %c0_50 = arith.constant 0 : index
    %c0_51 = arith.constant 0 : index
    %154 = vector.load %arg2[%c0_49, %153, %c0_50, %c0_51] : memref<1x4x8x96xf32, #tpu.memory_space<vmem>>, vector<1x1x8x96xf32>
    %155 = vector.shape_cast %154 : vector<1x1x8x96xf32> to vector<8x96xf32>
    %cst_52 = arith.constant dense<0.000000e+00> : vector<8x96xf32>
    %156 = tpu.matmul %143, %4, %cst_52 {dimension_numbers = #tpu.dot_dimension_numbers<[1], [0], [0], [1], [0, 0, 1, 1], [], []>} : vector<8x32xf32>, vector<32x96xf32>, vector<8x96xf32> -> vector<8x96xf32>
    %157 = vector.extract_strided_slice %155 {offsets = [0, 0], sizes = [8, 32], strides = [1, 1]} : vector<8x96xf32> to vector<8x32xf32>
    %158 = vector.extract_strided_slice %156 {offsets = [0, 0], sizes = [8, 32], strides = [1, 1]} : vector<8x96xf32> to vector<8x32xf32>
    %159 = arith.addf %157, %158 : vector<8x32xf32>
    %160 = arith.negf %159 : vector<8x32xf32>
    %161 = math.exp %160 : vector<8x32xf32>
    %cst_53 = arith.constant 1.000000e+00 : f32
    %162 = vector.broadcast %cst_53 : f32 to vector<8x32xf32>
    %163 = arith.addf %162, %161 : vector<8x32xf32>
    %164 = arith.divf %162, %163 : vector<8x32xf32>
    %165 = vector.extract_strided_slice %155 {offsets = [0, 32], sizes = [8, 32], strides = [1, 1]} : vector<8x96xf32> to vector<8x32xf32>
    %166 = vector.extract_strided_slice %156 {offsets = [0, 32], sizes = [8, 32], strides = [1, 1]} : vector<8x96xf32> to vector<8x32xf32>
    %167 = arith.addf %165, %166 : vector<8x32xf32>
    %168 = arith.negf %167 : vector<8x32xf32>
    %169 = math.exp %168 : vector<8x32xf32>
    %cst_54 = arith.constant 1.000000e+00 : f32
    %170 = vector.broadcast %cst_54 : f32 to vector<8x32xf32>
    %171 = arith.addf %170, %169 : vector<8x32xf32>
    %172 = arith.divf %170, %171 : vector<8x32xf32>
    %173 = vector.extract_strided_slice %155 {offsets = [0, 64], sizes = [8, 32], strides = [1, 1]} : vector<8x96xf32> to vector<8x32xf32>
    %174 = vector.extract_strided_slice %156 {offsets = [0, 64], sizes = [8, 32], strides = [1, 1]} : vector<8x96xf32> to vector<8x32xf32>
    %175 = vector.broadcast %6 : vector<1x32xf32> to vector<8x32xf32>
    %176 = arith.addf %174, %175 : vector<8x32xf32>
    %177 = arith.mulf %164, %176 : vector<8x32xf32>
    %178 = arith.addf %173, %177 : vector<8x32xf32>
    %179 = math.tanh %178 : vector<8x32xf32>
    %cst_55 = arith.constant 1.000000e+00 : f32
    %180 = vector.broadcast %cst_55 : f32 to vector<8x32xf32>
    %181 = arith.subf %180, %172 : vector<8x32xf32>
    %182 = arith.mulf %181, %179 : vector<8x32xf32>
    %183 = arith.mulf %172, %143 : vector<8x32xf32>
    %184 = arith.addf %182, %183 : vector<8x32xf32>
    %c4_i32_56 = arith.constant 4 : i32
    %185 = arith.muli %11, %c4_i32_56 : i32
    %186 = arith.addi %185, %152 : i32
    %c10_i32_57 = arith.constant 10 : i32
    %187 = arith.cmpi slt, %186, %c10_i32_57 : i32
    %188 = arith.select %187, %184, %143 : vector<8x32xf32>
    %189 = arith.index_cast %152 : i32 to index
    %c0_58 = arith.constant 0 : index
    %c0_59 = arith.constant 0 : index
    %190 = vector.load %arg9[%189, %c0_58, %c0_59] : memref<4x8x32xf32, #tpu.memory_space<vmem>>, vector<1x8x32xf32>
    %191 = vector.shape_cast %190 : vector<1x8x32xf32> to vector<8x32xf32>
    %192 = vector.shape_cast %188 : vector<8x32xf32> to vector<1x8x32xf32>
    tpu.vector_store %arg9[%189, %c0_58, %c0_59], %192 {strides = array<i32>} : memref<4x8x32xf32, #tpu.memory_space<vmem>>, vector<1x8x32xf32>,
    %c4_i32_60 = arith.constant 4 : i32
    %c0_61 = arith.constant 0 : index
    %c0_62 = arith.constant 0 : index
    %193 = vector.load %arg8[%c0_61, %c0_62] : memref<8x32xf32, #tpu.memory_space<vmem>>, vector<8x32xf32>
    tpu.vector_store %arg8[%c0_61, %c0_62], %188 {strides = array<i32>} : memref<8x32xf32, #tpu.memory_space<vmem>>, vector<8x32xf32>,
    %c0_63 = arith.constant 0 : index
    %c0_64 = arith.constant 0 : index
    %c0_65 = arith.constant 0 : index
    %194 = vector.load %arg9[%c0_63, %c0_64, %c0_65] : memref<4x8x32xf32, #tpu.memory_space<vmem>>, vector<4x8x32xf32>
    %c0_66 = arith.constant 0 : index
    %c0_67 = arith.constant 0 : index
    %c0_68 = arith.constant 0 : index
    %c0_69 = arith.constant 0 : index
    %195 = vector.load %arg6[%c0_66, %c0_67, %c0_68, %c0_69] : memref<1x4x8x32xf32, #tpu.memory_space<vmem>>, vector<1x4x8x32xf32>
    %196 = vector.shape_cast %195 : vector<1x4x8x32xf32> to vector<4x8x32xf32>
    %197 = vector.shape_cast %194 : vector<4x8x32xf32> to vector<1x4x8x32xf32>
    tpu.vector_store %arg6[%c0_66, %c0_67, %c0_68, %c0_69], %197 {strides = array<i32>} : memref<1x4x8x32xf32, #tpu.memory_space<vmem>>, vector<1x4x8x32xf32>,
    %c2_i32_70 = arith.constant 2 : i32
    %198 = arith.cmpi eq, %arg1, %c2_i32_70 : i32
    %199 = arith.extui %198 : i1 to i32
    %c0_i32_71 = arith.constant 0 : i32
    %200 = arith.cmpi ne, %199, %c0_i32_71 : i32
    scf.if %200 {
      %c0_72 = arith.constant 0 : index
      %c0_73 = arith.constant 0 : index
      %c0_74 = arith.constant 0 : index
      %201 = vector.load %arg7[%c0_72, %c0_73, %c0_74] : memref<1x8x32xf32, #tpu.memory_space<vmem>>, vector<1x8x32xf32>
      %202 = vector.shape_cast %201 : vector<1x8x32xf32> to vector<8x32xf32>
      %203 = vector.shape_cast %188 : vector<8x32xf32> to vector<1x8x32xf32>
      tpu.vector_store %arg7[%c0_72, %c0_73, %c0_74], %203 {strides = array<i32>} : memref<1x8x32xf32, #tpu.memory_space<vmem>>, vector<1x8x32xf32>,
    } else {
    }
    return
  }
  func.func @transform_0(%arg0: i32, %arg1: i32) -> (i32, i32, i32, i32) {
    %c1_i32 = arith.constant 1 : i32
    %0 = arith.subi %c1_i32, %arg0 : i32
    %1 = arith.muli %0, %arg1 : i32
    %c2_i32 = arith.constant 2 : i32
    %2 = arith.subi %c2_i32, %arg1 : i32
    %3 = arith.muli %arg0, %2 : i32
    %4 = arith.addi %1, %3 : i32
    %c0_i32 = arith.constant 0 : i32
    %c0_i32_0 = arith.constant 0 : i32
    %c0_i32_1 = arith.constant 0 : i32
    return %arg0, %4, %c0_i32, %c0_i32_0 : i32, i32, i32, i32
  }
  func.func @transform_1(%arg0: i32, %arg1: i32) -> (i32, i32, i32) {
    %c0_i32 = arith.constant 0 : i32
    %c0_i32_0 = arith.constant 0 : i32
    %c0_i32_1 = arith.constant 0 : i32
    return %arg0, %c0_i32, %c0_i32_0 : i32, i32, i32
  }
  func.func @transform_2(%arg0: i32, %arg1: i32) -> (i32, i32, i32) {
    %c0_i32 = arith.constant 0 : i32
    %c0_i32_0 = arith.constant 0 : i32
    %c0_i32_1 = arith.constant 0 : i32
    return %arg0, %c0_i32, %c0_i32_0 : i32, i32, i32
  }
  func.func @transform_3(%arg0: i32, %arg1: i32) -> (i32, i32, i32) {
    %c0_i32 = arith.constant 0 : i32
    %c0_i32_0 = arith.constant 0 : i32
    %c0_i32_1 = arith.constant 0 : i32
    return %arg0, %c0_i32, %c0_i32_0 : i32, i32, i32
  }
  func.func @transform_4(%arg0: i32, %arg1: i32) -> (i32, i32, i32, i32) {
    %c1_i32 = arith.constant 1 : i32
    %0 = arith.subi %c1_i32, %arg0 : i32
    %1 = arith.muli %0, %arg1 : i32
    %c2_i32 = arith.constant 2 : i32
    %2 = arith.subi %c2_i32, %arg1 : i32
    %3 = arith.muli %arg0, %2 : i32
    %4 = arith.addi %1, %3 : i32
    %c0_i32 = arith.constant 0 : i32
    %c0_i32_0 = arith.constant 0 : i32
    %c0_i32_1 = arith.constant 0 : i32
    return %arg0, %4, %c0_i32, %c0_i32_0 : i32, i32, i32, i32
  }
  func.func @transform_5(%arg0: i32, %arg1: i32) -> (i32, i32, i32) {
    %c0_i32 = arith.constant 0 : i32
    %c0_i32_0 = arith.constant 0 : i32
    %c0_i32_1 = arith.constant 0 : i32
    return %arg0, %c0_i32, %c0_i32_0 : i32, i32, i32
  }
}

</mosaic_0001>

<bundles_post_ra>
// kernel: encoder_forward.2
= control target key start
LH: loop header
LB: loop body
LE: loop exit
PB: predicated region body
PF: predicated region fallthrough
CT: control target
= control target key end

     0   :  { %s1111_s18 = smov 0   ;;  %s1113_s19 = smov 0   ;;  %s1281_s0 = inlined_call_operand.vmem [shape: f32[2,12,8,96], index: 0, kind: input, shape index: {}]   ;;  %s1282_s1 = inlined_call_operand.vmem [shape: f32[2,8,32], index: 1, kind: input, shape index: {}]   ;;  %s1283_s2 = inlined_call_operand.vmem [shape: f32[2,32,96], index: 2, kind: input, shape index: {}]   ;;  %s1284_s3 = inlined_call_operand.vmem [shape: f32[2,1,32], index: 3, kind: input, shape index: {}]   ;;  %s1285_s4 = inlined_call_operand.vmem [shape: f32[2,12,8,32], index: 4, kind: output, shape index: {0}]   ;;  %s1286_s5 = inlined_call_operand.vmem [shape: f32[2,8,32], index: 5, kind: output, shape index: {1}]  }
   0x1   :  { %1290 = sst [smem:[#allocation9_spill]] %s1282_s1  ;;  %s1115_s20 = smov 0  }
   0x2   :  { %s1117_s21 = smov 0   ;;  %s1119_s22 = smov 0  }
   0x3 LB: > { %1291 = sst [smem:[#allocation4_spill]] %s1068_s20  ;;  %s25_s23 = sadd.s32 1, %s1068_s20  ;;  %s1076_s22 = sphi %s1119_s22, %s16_s22   ;;  %s1072_s21 = sphi %s1117_s21, %s1301_s21   ;;  %s1068_s20 = sphi %s1115_s20, %s1300_s20   ;;  %s1064_s19 = sphi %s1113_s19, %s1299_s19   ;;  %s1060_s18 = sphi %s1111_s18, %s1298_s18  }
   0x4   : > { %1292 = sst [smem:[#allocation5_spill]] %s1072_s21  ;;  %s28_s24 = sadd.s32 1, %s1072_s21 }
   0x5   : > { %1293 = sst [smem:[#allocation6_spill]] %s1076_s22  ;;  %p26_p0 = scmp.ge.s32.totalorder %s25_s23, 3 }
   0x6   : > { %p940_p1 = scmp.ge.s32.totalorder %s1076_s22, 1  ;;  %p268_p2 = scmp.lt.s32.totalorder %s1076_s22, 7 }
   0x7   : > { %s1303_s23 = smov (%p26_p0, %s25_s23), 0  ;;  %s1305_s24 = smov (!%p26_p0, %s28_s24), %s1072_s21 }
   0x8   : > { %1294 = sst [smem:[#allocation7_spill]] %s1303_s23  ;;  %p269_p3 = pnand %p940_p1, %p268_p2 }
   0x9   : > { %p30_p4 = scmp.ge.s32.totalorder %s1305_s24, 2  ;;  %s1146_s25 = ssub.s32 (!%p269_p3), 1, %s1064_s19 }
   0xa   : > { %272 = sbr.rel (%p269_p3) target bundleno = 2359 (0x937), region = 36  ;;  %s332_s26 = ssub.s32 (!%p269_p3), 2, %s1060_s18 }
   0xb   : > { %s1307_s24 = smov (%p30_p4, %s1305_s24), 0  ;;  %s331_s27 = smul.u32 (!%p269_p3), %s1060_s18, %s1146_s25 }
   0xc   : > { %1295 = sst [smem:[#allocation8_spill]] %s1307_s24  ;;  %p336_p5 = scmp.lt.s32.totalorder (!%p269_p3), %s1064_s19, 1 }
   0xd   : > { %s333_s28 = smul.u32 (!%p269_p3), %s1064_s19, %s332_s26  ;;  %s1296_s1 = sld [smem:[#allocation9_spill]] (!%p269_p3) }
   0xe   : > { %p949_p7 = scmp.ne.s32.totalorder (!%p269_p3), %s1060_s18, 0 }
   0xf   : > { %s337_s29 = scalar_select %p336_p5, %s1064_s19, 1 }
  0x10   : > { %s334_s30 = sadd.s32 %s333_s28, %s331_s27 }
  0x11   : > { %s1154_s6 = sshll.u32 %s334_s30, 2  ;;  %s969_s7 = smul.u32 12, %s337_s29 }
  0x12   : > { %p338_p6 = scmp.lt.s32.totalorder %s1154_s6, 11  ;;  %s943_s8 = sshll.u32 %s337_s29, 3 }
  0x13   : > { %s353_s11 = scalar_lea.vmem %s1296_s1, %s943_s8  ;;  %s968_s12 = sshll.u32 %s337_s29, 5 }
  0x14   : > { %s339_s13 = scalar_select %p338_p6, %s1154_s6, 11 }
  0x15   : > { %s358_s16 = scalar_lea.vmem %s1283_s2, %s968_s12  ;;  %s361_s27 = scalar_lea.vmem %s1284_s3, %s337_s29 }
  0x16   : > { %s341_s28 = sadd.s32 %s969_s7, %s339_s13  ;;  %s1170_s23 = scalar_lea.vmem %s1286_s5, %s943_s8 }
  0x17   : > { %s942_s21 = sshll.u32 %s341_s28, 3  ;;  %389 = sbr.rel (%p949_p7) target bundleno = 30 (0x1e), region = 40 }
  0x18   : > { %s1175_s10 = scalar_lea.vmem %s1281_s0, %s942_s21  ;;  %s1180_s12 = scalar_lea.vmem %s1285_s4, %s942_s21 }
  0x1c   : > { %v390_v0 = vld [vmem:[%s353_s11] sm:$0xff]  ;;  %vm391_vm0 = vcmask 261120  }
  0x1d   : > { %392 = vst.msk [vmem:[#allocation2] sm:$0xff] %vm391_vm0, %v390_v0 }
  0x1e PF: > { %v396_v1 = vld [vmem:[%s358_s16 + $0x18] sm:$0xff]  ;;  %v395_v2 = vld [vmem:[%s358_s16 + $0x10] sm:$0xff]  ;;  %v394_v4 = vld [vmem:[%s358_s16 + $0x8] sm:$0xff]  ;;  %s1078_s20 = smov 32   ;;  %s1079_s1 = smov 64   ;;  %vm408_vm1 = vcmask 261120  }
  0x1f   : > { %424 = vmatpush.msra.mxu0 %v396_v1  ;;  %512 = vmatpush.msra.mxu1 %v396_v1  ;;  %v1013_v5 = vld [vmem:[%s361_s27] ss:$0 sm:$0xff]  ;;  %s950_s21 = smul.u32 24, %s1064_s19  ;;  %s1080_s24 = smov 96  }
  0x20   : > { %591 = vmatpush.msra.mxu2 %v396_v1  ;;  %v393_v6 = vld [vmem:[%s358_s16] sm:$0xff]  ;;  %454 = vrot.lane.b32.xlu0 %v1013_v5, %s1079_s1  ;;  %s404_s29 = smul.u32 3, %s1064_s19  ;;  %s954_s13 = sshll.u32 %s1064_s19, 1 }
  0x21   : > { %425 = vmatpush.msra.mxu0 %v395_v2  ;;  %513 = vmatpush.msra.mxu1 %v395_v2  ;;  %s406_s22 = scalar_lea.vmem %s1175_s10, %s950_s21  ;;  %s491_s11 = scalar_lea.vmem [#allocation3], %s950_s21 }
  0x22   : > { %592 = vmatpush.msra.mxu2 %v395_v2  ;;  %669 = vmatpush.msra.mxu3 %v396_v1  ;;  %v407_v10 = vld [vmem:[%s406_s22] sm:$0xff]  ;;  %s481_s7 = sadd.s32 %s1154_s6, %s404_s29  ;;  %s1206_s14 = sadd.s32 %s954_s13, %s1146_s25 }
  0x23   : > { %426 = vmatpush.msra.mxu0 %v394_v4  ;;  %514 = vmatpush.msra.mxu1 %v394_v4  ;;  %p482_p8 = scmp.lt.s32.totalorder %s481_s7, 10  ;;  %s955_s15 = sshll.u32 %s1206_s14, 3 }
  0x24   : > { %v403_v3 = vld [vmem:[#allocation2] sm:$0xff]  ;;  %593 = vmatpush.msra.mxu2 %v394_v4  ;;  %670 = vmatpush.msra.mxu3 %v395_v2  ;;  %s496_s16 = scalar_lea.vmem %s1175_s10, %s955_s15  ;;  %s560_s17 = sadd.s32 %s1154_s6, %s1206_s14 }
  0x25   : > { %475 = vrot.lane.b32.xlu2 %v403_v3, %s1078_s20  ;;  %427 = vmatpush.msra.mxu0 %v393_v6  ;;  %s483_s8 = scalar_select %p482_p8, 1, 0  ;;  %v497_v41 = vld [vmem:[%s496_s16] sm:$0xff] }
  0x26   : > { %515 = vmatpush.msra.mxu1 %v393_v6  ;;  %951 = vmatmul.msk.f32.vlgmr.msra.gmra.mxu0 %vm408_vm1, %v403_v3  ;;  %p561_p9 = scmp.lt.s32.totalorder %s560_s17, 10  ;;  %s570_s27 = scalar_lea.vmem [#allocation3], %s955_s15 }
  0x27   : > { %594 = vmatpush.msra.mxu2 %v393_v6  ;;  %671 = vmatpush.msra.mxu3 %v394_v4  ;;  %v484_v32 = vstv %s483_s8  ;;  %s958_s28 = sshll.u32 %s1146_s25, 1  ;;  %s962_s29 = smul.u32 24, %s1146_s25 }
  0x28   : > { %vm485_vm6 = vcmp.eq.s32.totalorder %v484_v32, 1  ;;  %s562_s26 = scalar_select %p561_p9, 1, 0 }
  0x29   : > { %672 = vmatpush.msra.mxu3 %v393_v6  ;;  %s1225_s30 = sadd.s32 %s1064_s19, %s958_s28  ;;  %s653_s7 = scalar_lea.vmem %s1175_s10, %s962_s29 }
  0x2a   : > { %v563_v62 = vstv %s562_s26  ;;  %s959_s9 = sshll.u32 %s1225_s30, 3  ;;  %s639_s19 = sadd.s32 %s1154_s6, %s1225_s30 }
  0x2b   : > { %vm564_vm11 = vcmp.eq.s32.totalorder %v563_v62, 1  ;;  %s575_s20 = scalar_lea.vmem %s1175_s10, %s959_s9  ;;  %p640_p10 = scmp.lt.s32.totalorder %s639_s19, 10 }
  0x2c   : > { %s649_s22 = scalar_lea.vmem [#allocation3], %s959_s9  ;;  %s651_s10 = smul.u32 3, %s1146_s25 }
  0x2d   : > { %s641_s21 = scalar_select %p640_p10, 1, 0 }
  0x2e   : > { %s717_s8 = sadd.s32 %s1154_s6, %s651_s10  ;;  %p965_p12 = scmp.ne.s32.totalorder %s1060_s18, 2 }
  0x2f   : > { %p718_p11 = scmp.lt.s32.totalorder %s717_s8, 10 }
  0x7f   : > { %v476_v30 = vpop.permute.xlu2 %475 }
  0x92   : > { %v1185_v7 = vpop.permute.xlu0 %454 }
  0xa3   : > { %v429_v8 = vpop.f32.mrf.mxu0 }
  0xa4   : > { %v457_v9 = vadd.f32 %v1185_v7, %v429_v8  ;;  %v432_v11 = vadd.f32 %v429_v8, %v407_v10  ;;  %v576_v8 = vld [vmem:[%s575_s20] sm:$0xff] }
  0xa6   : > { %459 = vrot.lane.b32.xlu0 %v457_v9, %s1079_s1  ;;  %v952_v12 = vmul.f32 -1.442695, %v432_v11 }
  0xa8   : > { %1014 = vpow2.f32 %v952_v12 }
  0xae   : > { %v1015_v13 = vpop.eup %1014 }
  0xaf   : > { %v436_v14 = vadd.f32 1.0, %v1015_v13 }
  0xb1   : > { %1016 = vrcp.f32 %v436_v14  ;;  %v448_v20 = vand.u32 2147483648, %v436_v14  ;;  %vm442_vm3 = vweird.f32 %v436_v14  ;;  %v446_v21 = vand.u32 2147483647, %v436_v14 }
  0xb3   : > { %v449_v23 = vor.u32 1.1754944e-38, %v448_v20  ;;  %vm447_vm5 = vcmp.eq.f32.partialorder %v446_v21, 8.507059e+37 }
  0xb7   : > { %v1017_v15 = vpop.eup %1016 }
  0xb8   : > { %v438_v16 = vmul.f32 %v1017_v15, %v436_v14  ;;  %vm443_vm2 = vweird.f32 %v1017_v15 }
  0xb9   : > { %vm444_vm4 = vmor %vm442_vm3, %vm443_vm2 }
  0xba   : > { %v439_v17 = vsub.f32 1.0, %v438_v16 }
  0xbc   : > { %v440_v18 = vmul.f32 %v1017_v15, %v439_v17 }
  0xbe   : > { %v441_v19 = vadd.f32 %v1017_v15, %v440_v18 }
  0xc0   : > { %v445_v22 = vsel %vm444_vm4, %v1017_v15, %v441_v19 }
  0xc1   : > { %v450_v24 = vsel %vm447_vm5, %v449_v23, %v445_v22 }
  0xc2   : > { %v469_v31 = vsub.f32 1.0, %v450_v24  ;;  %v478_v34 = vmul.f32 %v476_v30, %v450_v24 }
 0x118   : > { %v460_v25 = vpop.permute.xlu0 %459 }
 0x119   : > { %v462_v26 = vmul.f32 %v460_v25, %v450_v24 }
 0x11b   : > { %464 = vrot.lane.b32.xlu1 %v462_v26, %s1079_s1 }
 0x18d   : > { %v465_v27 = vpop.permute.xlu1 %464 }
 0x18e   : > { %v467_v28 = vadd.f32 %v465_v27, %v407_v10 }
 0x190   : > { %1018 = vtanh.f32 %v467_v28 }
 0x196   : > { %v1019_v29 = vpop.eup %1018 }
 0x197   : > { %471 = vrot.lane.b32.xlu1 %v1019_v29, %s1080_s24  ;;  %v642_v29 = vstv %s641_s21 }
 0x198   : > { %vm643_vm0 = vcmp.eq.s32.totalorder %v642_v29, 1 }
 0x209   : > { %v472_v33 = vpop.permute.xlu1 %471 }
 0x20a   : > { %v474_v35 = vmul.f32 %v472_v33, %v469_v31 }
 0x20c   : > { %v479_v36 = vadd.f32 %v478_v34, %v474_v35 }
 0x20e   : > { %v486_v37 = vsel %vm485_vm6, %v479_v36, %v476_v30 }
 0x20f   : > { %488 = vrot.lane.b32.xlu2 %v486_v37, %s1080_s24 }
 0x269   : > { %v489_v38 = vpop.permute.xlu2 %488 }
 0x26a   : > { %492 = vst.msk [vmem:[%s491_s11] sm:$0xff] %vm408_vm1, %v489_v38  ;;  %956 = vmatmul.msk.f32.vlgmr.msra.gmra.mxu1 %vm408_vm1, %v489_v38  ;;  %v654_v38 = vld [vmem:[%s653_s7] sm:$0xff]  ;;  %s719_s11 = scalar_select %p718_p11, 1, 0 }
 0x2e7   : > { %v517_v39 = vpop.f32.mrf.mxu1 }
 0x2e8   : > { %v540_v40 = vadd.f32 %v517_v39, %v1185_v7  ;;  %v520_v42 = vadd.f32 %v517_v39, %v497_v41 }
 0x2ea   : > { %542 = vrot.lane.b32.xlu0 %v540_v40, %s1079_s1  ;;  %v957_v43 = vmul.f32 -1.442695, %v520_v42 }
 0x2ec   : > { %1020 = vpow2.f32 %v957_v43 }
 0x2f2   : > { %v1021_v44 = vpop.eup %1020 }
 0x2f3   : > { %v524_v45 = vadd.f32 1.0, %v1021_v44 }
 0x2f5   : > { %1022 = vrcp.f32 %v524_v45  ;;  %v536_v51 = vand.u32 2147483648, %v524_v45  ;;  %vm530_vm8 = vweird.f32 %v524_v45  ;;  %v534_v52 = vand.u32 2147483647, %v524_v45 }
 0x2f7   : > { %v537_v54 = vor.u32 1.1754944e-38, %v536_v51  ;;  %vm535_vm10 = vcmp.eq.f32.partialorder %v534_v52, 8.507059e+37 }
 0x2fb   : > { %v1023_v46 = vpop.eup %1022 }
 0x2fc   : > { %v526_v47 = vmul.f32 %v1023_v46, %v524_v45  ;;  %vm531_vm7 = vweird.f32 %v1023_v46 }
 0x2fd   : > { %vm532_vm9 = vmor %vm530_vm8, %vm531_vm7 }
 0x2fe   : > { %v527_v48 = vsub.f32 1.0, %v526_v47 }
 0x300   : > { %v528_v49 = vmul.f32 %v1023_v46, %v527_v48 }
 0x302   : > { %v529_v50 = vadd.f32 %v1023_v46, %v528_v49 }
 0x304   : > { %v533_v53 = vsel %vm532_vm9, %v1023_v46, %v529_v50 }
 0x305   : > { %v538_v56 = vsel %vm535_vm10, %v537_v54, %v533_v53 }
 0x306   : > { %v552_v61 = vsub.f32 1.0, %v538_v56  ;;  %v558_v0 = vmul.f32 %v538_v56, %v486_v37 }
 0x35c   : > { %v543_v55 = vpop.permute.xlu0 %542 }
 0x35d   : > { %v545_v57 = vmul.f32 %v543_v55, %v538_v56 }
 0x35f   : > { %547 = vrot.lane.b32.xlu1 %v545_v57, %s1079_s1 }
 0x3d1   : > { %v548_v58 = vpop.permute.xlu1 %547 }
 0x3d2   : > { %v550_v59 = vadd.f32 %v548_v58, %v497_v41  ;;  %v720_v58 = vstv %s719_s11 }
 0x3d3   : > { %vm721_vm6 = vcmp.eq.s32.totalorder %v720_v58, 1 }
 0x3d4   : > { %1024 = vtanh.f32 %v550_v59 }
 0x3da   : > { %v1025_v60 = vpop.eup %1024 }
 0x3db   : > { %554 = vrot.lane.b32.xlu2 %v1025_v60, %s1080_s24 }
 0x435   : > { %v555_v63 = vpop.permute.xlu2 %554 }
 0x436   : > { %v557_v1 = vmul.f32 %v555_v63, %v552_v61 }
 0x438   : > { %v559_v2 = vadd.f32 %v558_v0, %v557_v1 }
 0x43a   : > { %v565_v3 = vsel %vm564_vm11, %v559_v2, %v486_v37 }
 0x43b   : > { %567 = vrot.lane.b32.xlu0 %v565_v3, %s1080_s24 }
 0x4ad   : > { %v568_v4 = vpop.permute.xlu0 %567 }
 0x4ae   : > { %571 = vst.msk [vmem:[%s570_s27] sm:$0xff] %vm408_vm1, %v568_v4  ;;  %960 = vmatmul.msk.f32.vlgmr.msra.gmra.mxu2 %vm408_vm1, %v568_v4 }
 0x531   : > { %v596_v5 = vpop.f32.mrf.mxu2 }
 0x532   : > { %v619_v6 = vadd.f32 %v596_v5, %v1185_v7  ;;  %v599_v9 = vadd.f32 %v596_v5, %v576_v8 }
 0x534   : > { %621 = vrot.lane.b32.xlu1 %v619_v6, %s1079_s1  ;;  %v961_v10 = vmul.f32 -1.442695, %v599_v9 }
 0x536   : > { %1026 = vpow2.f32 %v961_v10 }
 0x53c   : > { %v1027_v11 = vpop.eup %1026 }
 0x53d   : > { %v603_v12 = vadd.f32 1.0, %v1027_v11 }
 0x53f   : > { %1028 = vrcp.f32 %v603_v12  ;;  %v615_v18 = vand.u32 2147483648, %v603_v12  ;;  %vm609_vm13 = vweird.f32 %v603_v12  ;;  %v613_v19 = vand.u32 2147483647, %v603_v12 }
 0x541   : > { %v616_v21 = vor.u32 1.1754944e-38, %v615_v18  ;;  %vm614_vm15 = vcmp.eq.f32.partialorder %v613_v19, 8.507059e+37 }
 0x545   : > { %v1029_v13 = vpop.eup %1028 }
 0x546   : > { %v605_v14 = vmul.f32 %v1029_v13, %v603_v12  ;;  %vm610_vm12 = vweird.f32 %v1029_v13 }
 0x547   : > { %vm611_vm14 = vmor %vm609_vm13, %vm610_vm12 }
 0x548   : > { %v606_v15 = vsub.f32 1.0, %v605_v14 }
 0x54a   : > { %v607_v16 = vmul.f32 %v1029_v13, %v606_v15 }
 0x54c   : > { %v608_v17 = vadd.f32 %v1029_v13, %v607_v16 }
 0x54e   : > { %v612_v20 = vsel %vm611_vm14, %v1029_v13, %v608_v17 }
 0x54f   : > { %v617_v23 = vsel %vm614_vm15, %v616_v21, %v612_v20 }
 0x550   : > { %v631_v28 = vsub.f32 1.0, %v617_v23  ;;  %v637_v31 = vmul.f32 %v617_v23, %v565_v3 }
 0x5a6   : > { %v622_v22 = vpop.permute.xlu1 %621 }
 0x5a7   : > { %v624_v24 = vmul.f32 %v622_v22, %v617_v23 }
 0x5a9   : > { %626 = vrot.lane.b32.xlu2 %v624_v24, %s1079_s1 }
 0x603   : > { %v627_v25 = vpop.permute.xlu2 %626 }
 0x604   : > { %v629_v26 = vadd.f32 %v627_v25, %v576_v8 }
 0x606   : > { %1030 = vtanh.f32 %v629_v26 }
 0x60c   : > { %v1031_v27 = vpop.eup %1030 }
 0x60d   : > { %633 = vrot.lane.b32.xlu0 %v1031_v27, %s1080_s24 }
 0x67f   : > { %v634_v30 = vpop.permute.xlu0 %633 }
 0x680   : > { %v636_v32 = vmul.f32 %v634_v30, %v631_v28 }
 0x682   : > { %v638_v33 = vadd.f32 %v637_v31, %v636_v32 }
 0x684   : > { %v644_v34 = vsel %vm643_vm0, %v638_v33, %v565_v3 }
 0x685   : > { %646 = vrot.lane.b32.xlu1 %v644_v34, %s1080_s24 }
 0x6f7   : > { %v647_v35 = vpop.permute.xlu1 %646 }
 0x6f8   : > { %650 = vst.msk [vmem:[%s649_s22] sm:$0xff] %vm408_vm1, %v647_v35  ;;  %963 = vmatmul.msk.f32.vlgmr.msra.gmra.mxu3 %vm408_vm1, %v647_v35 }
 0x77b   : > { %v674_v36 = vpop.f32.mrf.mxu3 }
 0x77c   : > { %v697_v37 = vadd.f32 %v674_v36, %v1185_v7  ;;  %v677_v39 = vadd.f32 %v674_v36, %v654_v38 }
 0x77e   : > { %699 = vrot.lane.b32.xlu2 %v697_v37, %s1079_s1  ;;  %v964_v40 = vmul.f32 -1.442695, %v677_v39 }
 0x780   : > { %1032 = vpow2.f32 %v964_v40 }
 0x786   : > { %v1033_v41 = vpop.eup %1032 }
 0x787   : > { %v681_v42 = vadd.f32 1.0, %v1033_v41 }
 0x789   : > { %1034 = vrcp.f32 %v681_v42  ;;  %v693_v48 = vand.u32 2147483648, %v681_v42  ;;  %vm687_vm3 = vweird.f32 %v681_v42  ;;  %v691_v7 = vand.u32 2147483647, %v681_v42 }
 0x78b   : > { %v694_v50 = vor.u32 1.1754944e-38, %v693_v48  ;;  %vm692_vm5 = vcmp.eq.f32.partialorder %v691_v7, 8.507059e+37 }
 0x78f   : > { %v1035_v43 = vpop.eup %1034 }
 0x790   : > { %v683_v44 = vmul.f32 %v1035_v43, %v681_v42  ;;  %vm688_vm2 = vweird.f32 %v1035_v43 }
 0x791   : > { %vm689_vm4 = vmor %vm687_vm3, %vm688_vm2 }
 0x792   : > { %v684_v45 = vsub.f32 1.0, %v683_v44 }
 0x794   : > { %v685_v46 = vmul.f32 %v1035_v43, %v684_v45 }
 0x796   : > { %v686_v47 = vadd.f32 %v1035_v43, %v685_v46 }
 0x798   : > { %v690_v49 = vsel %vm689_vm4, %v1035_v43, %v686_v47 }
 0x799   : > { %v695_v52 = vsel %vm692_vm5, %v694_v50, %v690_v49 }
 0x79a   : > { %v709_v57 = vsub.f32 1.0, %v695_v52  ;;  %v715_v60 = vmul.f32 %v695_v52, %v644_v34 }
 0x7d8   : > { %v700_v51 = vpop.permute.xlu2 %699 }
 0x7d9   : > { %v702_v53 = vmul.f32 %v700_v51, %v695_v52 }
 0x7db   : > { %704 = vrot.lane.b32.xlu0 %v702_v53, %s1079_s1  ;;  %s727_s1 = scalar_lea.vmem [#allocation3], %s962_s29 }
 0x84d   : > { %v705_v54 = vpop.permute.xlu0 %704 }
 0x84e   : > { %v707_v55 = vadd.f32 %v705_v54, %v654_v38 }
 0x850   : > { %1036 = vtanh.f32 %v707_v55 }
 0x856   : > { %v1037_v56 = vpop.eup %1036 }
 0x857   : > { %711 = vrot.lane.b32.xlu1 %v1037_v56, %s1080_s24 }
 0x8c9   : > { %v712_v59 = vpop.permute.xlu1 %711 }
 0x8ca   : > { %v714_v61 = vmul.f32 %v712_v59, %v709_v57 }
 0x8cc   : > { %v716_v62 = vadd.f32 %v715_v60, %v714_v61 }
 0x8ce   : > { %v722_v63 = vsel %vm721_vm6, %v716_v62, %v644_v34 }
 0x8cf   : > { %724 = vrot.lane.b32.xlu2 %v722_v63, %s1080_s24 }
 0x929   : > { %v725_v0 = vpop.permute.xlu2 %724 }
 0x92a   : > { %728 = vst.msk [vmem:[%s727_s1] sm:$0xff] %vm408_vm1, %v725_v0 }
 0x92b   : > { %729 = vst.msk [vmem:[#allocation2] sm:$0xff] %vm408_vm1, %v725_v0 }
 0x931   : > { %v730_v1 = vld [vmem:[#allocation3] sm:$0xff]  ;;  %v731_v2 = vld [vmem:[#allocation3 + $0x8] sm:$0xff]  ;;  %v732_v3 = vld [vmem:[#allocation3 + $0x10] sm:$0xff]  ;;  %741 = sbr.rel (%p965_p12) target bundleno = 2359 (0x937), region = 44 }
 0x932   : > { %v733_v4 = vld [vmem:[#allocation3 + $0x18] sm:$0xff]  ;;  %734 = vst.msk [vmem:[%s1180_s12] sm:$0xff] %vm408_vm1, %v730_v1 }
 0x933   : > { %735 = vst.msk [vmem:[%s1180_s12 + $0x8] sm:$0xff] %vm408_vm1, %v731_v2 }
 0x934   : > { %736 = vst.msk [vmem:[%s1180_s12 + $0x10] sm:$0xff] %vm408_vm1, %v732_v3 }
 0x935   : > { %737 = vst.msk [vmem:[%s1180_s12 + $0x18] sm:$0xff] %vm408_vm1, %v733_v4 }
 0x936   : > { %742 = vst.msk [vmem:[%s1170_s23] sm:$0xff] %vm408_vm1, %v725_v0 }
 0x937 PF: > { %s1297_s25 = sld [smem:[#allocation6_spill]] }
 0x938   : > { %s1298_s18 = sld [smem:[#allocation4_spill]] }
 0x939   : > { %s1299_s19 = sld [smem:[#allocation5_spill]] }
 0x93a   : > { %s1300_s20 = sld [smem:[#allocation7_spill]] }
 0x93b   : > { %s1301_s21 = sld [smem:[#allocation8_spill]] }
 0x93d   : > { %s16_s22 = sadd.s32 1, %s1297_s25  }
 0x93e   : > { %p13_p13 = scmp.ge.s32.totalorder %s16_s22, 8  }
 0x940   :  { %15 = sbr.rel (!%p13_p13) target bundleno = 3 (0x3), region = 103 }

</bundles_post_ra>
